<compile_context>
chip_gen: v7x
topology: tpu7x:2x2x1
jax: 0.10.0
libtpu: 0.0.40
codegen_flags: <defaults>
</compile_context>

<pallas_src>
import functools
import math

import jax
import jax.numpy as jnp
from jax.experimental import pallas as pl
from jax.experimental.pallas import tpu as pltpu


def _round_up(x, m):
    return ((x + m - 1) // m) * m


def _cdiv(a, b):
    return (a + b - 1) // b


_INV_SQRT2 = 1.0 / math.sqrt(2.0)


def _erf(x):
    # Abramowitz & Stegun 7.1.26 (|err| ~ 1.5e-7): exact-GELU semantics
    # (torch.nn.GELU() default) using only Mosaic-friendly primitives.
    # The divide is routed to the EUP reciprocal slot (approx) to keep the
    # epilogue off the VALU critical path.
    a1, a2, a3, a4, a5 = 0.254829592, -0.284496736, 1.421413741, -1.453152027, 1.061405429
    p = 0.3275911
    ax = jnp.abs(x)
    t = pl.reciprocal(1.0 + p * ax, approx=True)
    poly = ((((a5 * t + a4) * t + a3) * t + a2) * t + a1) * t
    y = 1.0 - poly * jnp.exp(-ax * ax)
    return jnp.where(x >= 0, y, -y)


def _gelu(h):
    return 0.5 * h * (1.0 + _erf(h * _INV_SQRT2))


def _ffn_kernel(x_ref, g_ref, bt_ref, w1_ref, b1_ref, w2_ref, b2_ref,
                o_ref, xn_ref, acc_ref, *, eps):
    # x:(tm,D)  g/bt:(1,D)  w1:(D,tH) bf16  b1:(1,tH)  w2:(tH,Dp) bf16  b2:(1,Dp)
    # o:(tm,Dp)  xn scratch:(tm,D) bf16  acc scratch:(tm,Dp) f32
    k = pl.program_id(1)

    @pl.when(k == 0)
    def _():
        # LayerNorm once per M-tile (f32 statistics, biased variance like torch),
        # cached in bf16 for the MXU; zero the f32 accumulator.
        x = x_ref[...].astype(jnp.float32)
        mu = jnp.mean(x, axis=-1, keepdims=True)
        xc = x - mu
        var = jnp.mean(xc * xc, axis=-1, keepdims=True)
        xn = xc * jax.lax.rsqrt(var + eps) * g_ref[...] + bt_ref[...]
        xn_ref[...] = xn.astype(jnp.bfloat16)
        acc_ref[...] = jnp.zeros_like(acc_ref)

    # Linear-1 hidden block (bf16 MXU operands, f32 accumulation) + bias + exact GELU.
    h = jnp.dot(xn_ref[...], w1_ref[...],
                preferred_element_type=jnp.float32) + b1_ref[...]
    h = _gelu(h)

    # Linear-2 hidden block: accumulate into the resident f32 accumulator.
    acc_ref[...] += jnp.dot(h.astype(jnp.bfloat16), w2_ref[...],
                            preferred_element_type=jnp.float32)

    @pl.when(k == pl.num_programs(1) - 1)
    def _():
        o_ref[...] = (acc_ref[...] + b2_ref[...]).astype(o_ref.dtype)


def prepare_ffn_params(gamma, beta, w1, b1, w2, b2, *, hidden_block=512):
    """One-time parameter preparation (hoisted out of the per-call hot path).

    gamma/beta: (D,)   w1: (D, H), b1: (H,)   w2: (H, Dout), b2: (Dout,)
    (w1/w2 are the transposes of torch's (out, in) Linear weights.)
    Hidden / output dims are zero-padded to lane-dense multiples of 128 and the
    weights are cast to bf16 (native MXU input dtype).
    """
    assert hidden_block % 128 == 0
    D, H = w1.shape
    Dout = w2.shape[1]
    Hp128 = _round_up(H, 128)
    tH = Hp128 if Hp128 <= hidden_block else hidden_block
    Hp = _round_up(H, tH)
    Dp = _round_up(Dout, 128)
    return dict(
        g=gamma.reshape(1, D).astype(jnp.float32),
        bt=beta.reshape(1, D).astype(jnp.float32),
        w1=jnp.pad(w1, ((0, 0), (0, Hp - H))).astype(jnp.bfloat16),
        b1=jnp.pad(b1, (0, Hp - H)).reshape(1, Hp).astype(jnp.float32),
        w2=jnp.pad(w2, ((0, Hp - H), (0, Dp - Dout))).astype(jnp.bfloat16),
        b2=jnp.pad(b2, (0, Dp - Dout)).reshape(1, Dp).astype(jnp.float32),
        D=D, H=H, Dout=Dout, Hp=Hp, Dp=Dp, tH=tH,
    )


def feed_forward(x, params, *, eps=1e-5, max_rows_per_tile=512,
                 vmem_budget_bytes=40 * 2**20):
    """Fused LayerNorm -> Linear -> GELU -> Linear on (..., D) input."""
    D, Dout = params["D"], params["Dout"]
    Hp, Dp, tH = params["Hp"], params["Dp"], params["tH"]
    *lead, Dx = x.shape
    assert Dx == D
    M = math.prod(lead) if lead else 1
    x2d = x.reshape(M, D)
    isz = x.dtype.itemsize

    # ---- M-tile sizing from an explicit VMEM budget ------------------------------
    # Double-buffered streaming blocks + resident scratch must fit the budget so the
    # kernel neither OOMs nor spills on v7x's 64 MiB part / v5e's small scoped default.
    fixed = (2 * (D * tH * 2)          # W1 hidden block (bf16, double-buffered)
             + 2 * (tH * Dp * 2)       # W2 hidden block (bf16, double-buffered)
             + 2 * (tH * 4 + Dp * 4)   # b1 / b2 blocks
             + 4 * (D * 4))            # gamma / beta
    per_row = (2 * D * isz             # x tile (double-buffered)
               + 2 * Dp * isz          # output tile (double-buffered)
               + D * 2                 # xn scratch (bf16)
               + Dp * 4)               # f32 accumulator scratch
    tm_cap = max(8, ((vmem_budget_bytes - fixed) // per_row) // 8 * 8)
    max_tm = max(8, min(max_rows_per_tile, tm_cap))

    # Balanced M tiles; force >=2 tiles (when M allows) so the "parallel" axis spans
    # both TensorCores on v7x. Zero-padded rows are sliced off after the call.
    n_m = _cdiv(M, max_tm)
    if M > 8:
        n_m = max(n_m, 2)
    tm = _round_up(_cdiv(M, n_m), 8)
    Mp = tm * n_m
    if Mp != M:
        x2d = jnp.pad(x2d, ((0, Mp - M), (0, 0)))

    n_h = Hp // tH
    grid = (n_m, n_h)

    flops = 2 * Mp * D * Hp + 2 * Mp * Hp * Dp + 10 * Mp * D
    transcendentals = Mp * Hp
    bytes_accessed = (Mp * D * isz + Mp * Dp * isz
                      + n_m * (D * Hp * 2 + Hp * Dp * 2)   # weights re-streamed per M tile
                      + Hp * 4 + Dp * 4 + 2 * D * 4)

    out = pl.pallas_call(
        functools.partial(_ffn_kernel, eps=eps),
        out_shape=jax.ShapeDtypeStruct((Mp, Dp), x.dtype),
        grid_spec=pltpu.PrefetchScalarGridSpec(
            num_scalar_prefetch=0,
            grid=grid,
            in_specs=[
                pl.BlockSpec((tm, D), lambda i, k: (i, 0)),    # x tile (revisited over k)
                pl.BlockSpec((1, D), lambda i, k: (0, 0)),     # gamma
                pl.BlockSpec((1, D), lambda i, k: (0, 0)),     # beta
                pl.BlockSpec((D, tH), lambda i, k: (0, k)),    # W1 hidden block (bf16)
                pl.BlockSpec((1, tH), lambda i, k: (0, k)),    # b1 hidden block
                pl.BlockSpec((tH, Dp), lambda i, k: (k, 0)),   # W2 hidden block (bf16)
                pl.BlockSpec((1, Dp), lambda i, k: (0, 0)),    # b2
            ],
            out_specs=pl.BlockSpec((tm, Dp), lambda i, k: (i, 0)),
            scratch_shapes=[
                pltpu.VMEM((tm, D), jnp.bfloat16),   # cached LayerNorm output
                pltpu.VMEM((tm, Dp), jnp.float32),   # f32 output accumulator
            ],
        ),
        compiler_params=pltpu.CompilerParams(
            dimension_semantics=("parallel", "arbitrary"),
            vmem_limit_bytes=48 * 2**20),
        cost_estimate=pl.CostEstimate(
            flops=flops, transcendentals=transcendentals,
            bytes_accessed=bytes_accessed),
    )(x2d, params["g"], params["bt"], params["w1"], params["b1"],
      params["w2"], params["b2"])

    return out[:M, :Dout].reshape(*lead, Dout)


if __name__ == "__main__":
    # Small shapes consistent with the module: batch=2, seq=8, dim=32, hidden_dim=64.
    B, N, dim, hidden_dim = 2, 8, 32, 64

    key = jax.random.PRNGKey(0)
    kx, kg, kb, kw1, kb1, kw2, kb2 = jax.random.split(key, 7)
    x = jax.random.normal(kx, (B, N, dim), dtype=jnp.float32)
    gamma = 1.0 + 0.1 * jax.random.normal(kg, (dim,), dtype=jnp.float32)
    beta = 0.1 * jax.random.normal(kb, (dim,), dtype=jnp.float32)
    # torch nn.Linear stores weight as (out, in); we pass the (in, out) transposes.
    w1 = 0.05 * jax.random.normal(kw1, (dim, hidden_dim), dtype=jnp.float32)
    b1 = 0.05 * jax.random.normal(kb1, (hidden_dim,), dtype=jnp.float32)
    w2 = 0.05 * jax.random.normal(kw2, (hidden_dim, dim), dtype=jnp.float32)
    b2 = 0.05 * jax.random.normal(kb2, (dim,), dtype=jnp.float32)

    params = prepare_ffn_params(gamma, beta, w1, b1, w2, b2)
    out = feed_forward(x, params)
    out = jax.block_until_ready(out)

    # Pure-JAX f32 reference mirroring torch: LayerNorm -> Linear -> GELU(exact) -> Linear.
    mu = jnp.mean(x, axis=-1, keepdims=True)
    var = jnp.mean((x - mu) ** 2, axis=-1, keepdims=True)
    xn = (x - mu) * jax.lax.rsqrt(var + 1e-5) * gamma + beta
    h = jnp.einsum("bnd,dh->bnh", xn, w1,
                   precision=jax.lax.Precision.HIGHEST) + b1
    h = 0.5 * h * (1.0 + jax.lax.erf(h * _INV_SQRT2))
    ref = jnp.einsum("bnh,hd->bnd", h, w2,
                     precision=jax.lax.Precision.HIGHEST) + b2

    assert out.shape == (B, N, dim)
    err = float(jnp.max(jnp.abs(out - ref)))
    # bf16 MXU operands (f32 accumulation) + approx-EUP reciprocal in the erf epilogue
    # give ~1e-3-level deviation from the exact-f32 reference; 1e-2 tolerance is ample.
    assert jnp.allclose(out, ref, atol=1e-2, rtol=1e-2), f"max abs err {err}"
    print("KERNEL_OK")
</pallas_src>

<mosaic_0001>
module attributes {stable_mosaic.version = 11 : i64} {
  func.func @_ffn_kernel(%arg0: i32, %arg1: i32, %arg2: memref<8x32xf32, #tpu.memory_space<vmem>>, %arg3: memref<1x32xf32, #tpu.memory_space<vmem>>, %arg4: memref<1x32xf32, #tpu.memory_space<vmem>>, %arg5: memref<32x128xbf16, #tpu.memory_space<vmem>>, %arg6: memref<1x128xf32, #tpu.memory_space<vmem>>, %arg7: memref<128x128xbf16, #tpu.memory_space<vmem>>, %arg8: memref<1x128xf32, #tpu.memory_space<vmem>>, %arg9: memref<8x128xf32, #tpu.memory_space<vmem>>, %arg10: memref<8x32xbf16, #tpu.memory_space<vmem>>, %arg11: memref<8x128xf32, #tpu.memory_space<vmem>>) attributes {dimension_semantics = [#tpu.dimension_semantics<parallel>, #tpu.dimension_semantics<arbitrary>], iteration_bounds = array<i64: 2, 1>, scalar_prefetch = 0 : i64, scratch_operands = 2 : i64, tpu.core_type = #tpu.core_type<tc>, window_params = [{transform_indices = @transform_0, window_bounds = array<i64: 8, 32>}, {pipeline_mode = #tpu.pipeline_mode<synchronous>, transform_indices = @transform_1, window_bounds = array<i64: 1, 32>}, {pipeline_mode = #tpu.pipeline_mode<synchronous>, transform_indices = @transform_2, window_bounds = array<i64: 1, 32>}, {transform_indices = @transform_3, window_bounds = array<i64: 32, 128>}, {transform_indices = @transform_4, window_bounds = array<i64: 1, 128>}, {transform_indices = @transform_5, window_bounds = array<i64: 128, 128>}, {pipeline_mode = #tpu.pipeline_mode<synchronous>, transform_indices = @transform_6, window_bounds = array<i64: 1, 128>}, {transform_indices = @transform_7, window_bounds = array<i64: 8, 128>}]} {
    %c0_i32 = arith.constant 0 : i32
    %0 = arith.cmpi eq, %arg1, %c0_i32 : i32
    %1 = arith.extui %0 : i1 to i32
    %c0_i32_0 = arith.constant 0 : i32
    %2 = arith.cmpi ne, %1, %c0_i32_0 : i32
    scf.if %2 {
      %c0_29 = arith.constant 0 : index
      %c0_30 = arith.constant 0 : index
      %57 = vector.load %arg2[%c0_29, %c0_30] : memref<8x32xf32, #tpu.memory_space<vmem>>, vector<8x32xf32>
      %cst_31 = arith.constant dense<0.000000e+00> : vector<8xf32>
      %58 = vector.multi_reduction <add>, %57, %cst_31 [1] : vector<8x32xf32> to vector<8xf32>
      %59 = vector.shape_cast %58 : vector<8xf32> to vector<8x1xf32>
      %cst_32 = arith.constant 3.200000e+01 : f32
      %60 = vector.broadcast %cst_32 : f32 to vector<8x1xf32>
      %61 = arith.divf %59, %60 : vector<8x1xf32>
      %62 = vector.broadcast %61 : vector<8x1xf32> to vector<8x32xf32>
      %63 = arith.subf %57, %62 : vector<8x32xf32>
      %64 = arith.mulf %63, %63 : vector<8x32xf32>
      %cst_33 = arith.constant dense<0.000000e+00> : vector<8xf32>
      %65 = vector.multi_reduction <add>, %64, %cst_33 [1] : vector<8x32xf32> to vector<8xf32>
      %66 = vector.shape_cast %65 : vector<8xf32> to vector<8x1xf32>
      %cst_34 = arith.constant 3.200000e+01 : f32
      %67 = vector.broadcast %cst_34 : f32 to vector<8x1xf32>
      %68 = arith.divf %66, %67 : vector<8x1xf32>
      %cst_35 = arith.constant 9.99999974E-6 : f32
      %69 = vector.broadcast %cst_35 : f32 to vector<8x1xf32>
      %70 = arith.addf %68, %69 : vector<8x1xf32>
      %71 = math.rsqrt %70 : vector<8x1xf32>
      %72 = vector.broadcast %71 : vector<8x1xf32> to vector<8x32xf32>
      %73 = arith.mulf %63, %72 : vector<8x32xf32>
      %c0_36 = arith.constant 0 : index
      %c0_37 = arith.constant 0 : index
      %74 = vector.load %arg3[%c0_36, %c0_37] : memref<1x32xf32, #tpu.memory_space<vmem>>, vector<1x32xf32>
      %75 = vector.broadcast %74 : vector<1x32xf32> to vector<8x32xf32>
      %76 = arith.mulf %73, %75 : vector<8x32xf32>
      %c0_38 = arith.constant 0 : index
      %c0_39 = arith.constant 0 : index
      %77 = vector.load %arg4[%c0_38, %c0_39] : memref<1x32xf32, #tpu.memory_space<vmem>>, vector<1x32xf32>
      %78 = vector.broadcast %77 : vector<1x32xf32> to vector<8x32xf32>
      %79 = arith.addf %76, %78 : vector<8x32xf32>
      %80 = arith.truncf %79 : vector<8x32xf32> to vector<8x32xbf16>
      %c0_40 = arith.constant 0 : index
      %c0_41 = arith.constant 0 : index
      %81 = vector.load %arg10[%c0_40, %c0_41] : memref<8x32xbf16, #tpu.memory_space<vmem>>, vector<8x32xbf16>
      tpu.vector_store %arg10[%c0_40, %c0_41], %80 {strides = array<i32>} : memref<8x32xbf16, #tpu.memory_space<vmem>>, vector<8x32xbf16>,
      %cst_42 = arith.constant 0.000000e+00 : f32
      %82 = vector.broadcast %cst_42 : f32 to vector<8x128xf32>
      %c0_43 = arith.constant 0 : index
      %c0_44 = arith.constant 0 : index
      %83 = vector.load %arg11[%c0_43, %c0_44] : memref<8x128xf32, #tpu.memory_space<vmem>>, vector<8x128xf32>
      tpu.vector_store %arg11[%c0_43, %c0_44], %82 {strides = array<i32>} : memref<8x128xf32, #tpu.memory_space<vmem>>, vector<8x128xf32>,
    } else {
    }
    %c0 = arith.constant 0 : index
    %c0_1 = arith.constant 0 : index
    %3 = vector.load %arg10[%c0, %c0_1] : memref<8x32xbf16, #tpu.memory_space<vmem>>, vector<8x32xbf16>
    %c0_2 = arith.constant 0 : index
    %c0_3 = arith.constant 0 : index
    %4 = vector.load %arg5[%c0_2, %c0_3] : memref<32x128xbf16, #tpu.memory_space<vmem>>, vector<32x128xbf16>
    %cst = arith.constant dense<0.000000e+00> : vector<8x128xf32>
    %5 = tpu.matmul %3, %4, %cst {dimension_numbers = #tpu.dot_dimension_numbers<[1], [0], [0], [1], [0, 0, 1, 1], [], []>} : vector<8x32xbf16>, vector<32x128xbf16>, vector<8x128xf32> -> vector<8x128xf32>
    %c0_4 = arith.constant 0 : index
    %c0_5 = arith.constant 0 : index
    %6 = vector.load %arg6[%c0_4, %c0_5] : memref<1x128xf32, #tpu.memory_space<vmem>>, vector<1x128xf32>
    %7 = vector.broadcast %6 : vector<1x128xf32> to vector<8x128xf32>
    %8 = arith.addf %5, %7 : vector<8x128xf32>
    %cst_6 = arith.constant 5.000000e-01 : f32
    %9 = vector.broadcast %cst_6 : f32 to vector<8x128xf32>
    %10 = arith.mulf %9, %8 : vector<8x128xf32>
    %cst_7 = arith.constant 0.707106769 : f32
    %11 = vector.broadcast %cst_7 : f32 to vector<8x128xf32>
    %12 = arith.mulf %8, %11 : vector<8x128xf32>
    %13 = math.absf %12 : vector<8x128xf32>
    %cst_8 = arith.constant 0.327591091 : f32
    %14 = vector.broadcast %cst_8 : f32 to vector<8x128xf32>
    %15 = arith.mulf %14, %13 : vector<8x128xf32>
    %cst_9 = arith.constant 1.000000e+00 : f32
    %16 = vector.broadcast %cst_9 : f32 to vector<8x128xf32>
    %17 = arith.addf %16, %15 : vector<8x128xf32>
    %18 = tpu.reciprocal %17 {approx = true} : vector<8x128xf32> -> vector<8x128xf32>
    %cst_10 = arith.constant 1.06140542 : f32
    %19 = vector.broadcast %cst_10 : f32 to vector<8x128xf32>
    %20 = arith.mulf %19, %18 : vector<8x128xf32>
    %cst_11 = arith.constant -1.45315206 : f32
    %21 = vector.broadcast %cst_11 : f32 to vector<8x128xf32>
    %22 = arith.addf %20, %21 : vector<8x128xf32>
    %23 = arith.mulf %22, %18 : vector<8x128xf32>
    %cst_12 = arith.constant 1.42141378 : f32
    %24 = vector.broadcast %cst_12 : f32 to vector<8x128xf32>
    %25 = arith.addf %23, %24 : vector<8x128xf32>
    %26 = arith.mulf %25, %18 : vector<8x128xf32>
    %cst_13 = arith.constant -0.284496725 : f32
    %27 = vector.broadcast %cst_13 : f32 to vector<8x128xf32>
    %28 = arith.addf %26, %27 : vector<8x128xf32>
    %29 = arith.mulf %28, %18 : vector<8x128xf32>
    %cst_14 = arith.constant 0.254829586 : f32
    %30 = vector.broadcast %cst_14 : f32 to vector<8x128xf32>
    %31 = arith.addf %29, %30 : vector<8x128xf32>
    %32 = arith.mulf %31, %18 : vector<8x128xf32>
    %cst_15 = arith.constant 0.000000e+00 : f32
    %33 = vector.broadcast %cst_15 : f32 to vector<8x128xf32>
    %34 = arith.subf %33, %13 : vector<8x128xf32>
    %35 = arith.mulf %34, %13 : vector<8x128xf32>
    %36 = math.exp %35 : vector<8x128xf32>
    %37 = arith.mulf %32, %36 : vector<8x128xf32>
    %cst_16 = arith.constant 1.000000e+00 : f32
    %38 = vector.broadcast %cst_16 : f32 to vector<8x128xf32>
    %39 = arith.subf %38, %37 : vector<8x128xf32>
    %cst_17 = arith.constant 0.000000e+00 : f32
    %40 = vector.broadcast %cst_17 : f32 to vector<8x128xf32>
    %41 = arith.cmpf oge, %12, %40 : vector<8x128xf32>
    %cst_18 = arith.constant 0.000000e+00 : f32
    %42 = vector.broadcast %cst_18 : f32 to vector<8x128xf32>
    %43 = arith.subf %42, %39 : vector<8x128xf32>
    %44 = arith.select %41, %39, %43 : vector<8x128xi1>, vector<8x128xf32>
    %cst_19 = arith.constant 1.000000e+00 : f32
    %45 = vector.broadcast %cst_19 : f32 to vector<8x128xf32>
    %46 = arith.addf %45, %44 : vector<8x128xf32>
    %47 = arith.mulf %10, %46 : vector<8x128xf32>
    %c0_20 = arith.constant 0 : index
    %c0_21 = arith.constant 0 : index
    %48 = vector.load %arg11[%c0_20, %c0_21] : memref<8x128xf32, #tpu.memory_space<vmem>>, vector<8x128xf32>
    %49 = arith.truncf %47 : vector<8x128xf32> to vector<8x128xbf16>
    %c0_22 = arith.constant 0 : index
    %c0_23 = arith.constant 0 : index
    %50 = vector.load %arg7[%c0_22, %c0_23] : memref<128x128xbf16, #tpu.memory_space<vmem>>, vector<128x128xbf16>
    %cst_24 = arith.constant dense<0.000000e+00> : vector<8x128xf32>
    %51 = tpu.matmul %49, %50, %cst_24 {dimension_numbers = #tpu.dot_dimension_numbers<[1], [0], [0], [1], [0, 0, 1, 1], [], []>} : vector<8x128xbf16>, vector<128x128xbf16>, vector<8x128xf32> -> vector<8x128xf32>
    %52 = arith.addf %48, %51 : vector<8x128xf32>
    %c0_25 = arith.constant 0 : index
    %c0_26 = arith.constant 0 : index
    %53 = vector.load %arg11[%c0_25, %c0_26] : memref<8x128xf32, #tpu.memory_space<vmem>>, vector<8x128xf32>
    tpu.vector_store %arg11[%c0_25, %c0_26], %52 {strides = array<i32>} : memref<8x128xf32, #tpu.memory_space<vmem>>, vector<8x128xf32>,
    %c0_i32_27 = arith.constant 0 : i32
    %54 = arith.cmpi eq, %arg1, %c0_i32_27 : i32
    %55 = arith.extui %54 : i1 to i32
    %c0_i32_28 = arith.constant 0 : i32
    %56 = arith.cmpi ne, %55, %c0_i32_28 : i32
    scf.if %56 {
      %c0_29 = arith.constant 0 : index
      %c0_30 = arith.constant 0 : index
      %57 = vector.load %arg11[%c0_29, %c0_30] : memref<8x128xf32, #tpu.memory_space<vmem>>, vector<8x128xf32>
      %c0_31 = arith.constant 0 : index
      %c0_32 = arith.constant 0 : index
      %58 = vector.load %arg8[%c0_31, %c0_32] : memref<1x128xf32, #tpu.memory_space<vmem>>, vector<1x128xf32>
      %59 = vector.broadcast %58 : vector<1x128xf32> to vector<8x128xf32>
      %60 = arith.addf %57, %59 : vector<8x128xf32>
      %c0_33 = arith.constant 0 : index
      %c0_34 = arith.constant 0 : index
      %61 = vector.load %arg9[%c0_33, %c0_34] : memref<8x128xf32, #tpu.memory_space<vmem>>, vector<8x128xf32>
      tpu.vector_store %arg9[%c0_33, %c0_34], %60 {strides = array<i32>} : memref<8x128xf32, #tpu.memory_space<vmem>>, vector<8x128xf32>,
    } else {
    }
    return
  }
  func.func @transform_0(%arg0: i32, %arg1: i32) -> (i32, i32) {
    %c0_i32 = arith.constant 0 : i32
    %c0_i32_0 = arith.constant 0 : i32
    return %arg0, %c0_i32 : i32, i32
  }
  func.func @transform_1(%arg0: i32, %arg1: i32) -> (i32, i32) {
    %c0_i32 = arith.constant 0 : i32
    %c0_i32_0 = arith.constant 0 : i32
    %c0_i32_1 = arith.constant 0 : i32
    return %c0_i32, %c0_i32_0 : i32, i32
  }
  func.func @transform_2(%arg0: i32, %arg1: i32) -> (i32, i32) {
    %c0_i32 = arith.constant 0 : i32
    %c0_i32_0 = arith.constant 0 : i32
    %c0_i32_1 = arith.constant 0 : i32
    return %c0_i32, %c0_i32_0 : i32, i32
  }
  func.func @transform_3(%arg0: i32, %arg1: i32) -> (i32, i32) {
    %c0_i32 = arith.constant 0 : i32
    %c0_i32_0 = arith.constant 0 : i32
    return %c0_i32, %arg1 : i32, i32
  }
  func.func @transform_4(%arg0: i32, %arg1: i32) -> (i32, i32) {
    %c0_i32 = arith.constant 0 : i32
    %c0_i32_0 = arith.constant 0 : i32
    return %c0_i32, %arg1 : i32, i32
  }
  func.func @transform_5(%arg0: i32, %arg1: i32) -> (i32, i32) {
    %c0_i32 = arith.constant 0 : i32
    %c0_i32_0 = arith.constant 0 : i32
    return %arg1, %c0_i32 : i32, i32
  }
  func.func @transform_6(%arg0: i32, %arg1: i32) -> (i32, i32) {
    %c0_i32 = arith.constant 0 : i32
    %c0_i32_0 = arith.constant 0 : i32
    %c0_i32_1 = arith.constant 0 : i32
    return %c0_i32, %c0_i32_0 : i32, i32
  }
  func.func @transform_7(%arg0: i32, %arg1: i32) -> (i32, i32) {
    %c0_i32 = arith.constant 0 : i32
    %c0_i32_0 = arith.constant 0 : i32
    return %arg0, %c0_i32 : i32, i32
  }
}

</mosaic_0001>

<bundles_post_ra>
// kernel: tpu_custom_call.1
= control target key start
LH: loop header
LB: loop body
LE: loop exit
PB: predicated region body
PF: predicated region fallthrough
CT: control target
= control target key end

     0   :  { %12 = vsyncpa [#allocation5], 0  ;;  %s1415_s0 = inlined_call_operand.hbm [shape: f32[16,32], index: 0, kind: input, shape index: {}]   ;;  %s1416_s1 = inlined_call_operand.vmem [shape: f32[1,32], index: 1, kind: input, shape index: {}]   ;;  %s1417_s2 = inlined_call_operand.vmem [shape: f32[1,32], index: 2, kind: input, shape index: {}]   ;;  %s1418_s3 = inlined_call_operand.hbm [shape: bf16[32,128], index: 3, kind: input, shape index: {}]   ;;  %s1419_s4 = inlined_call_operand.vmem [shape: f32[1,128], index: 4, kind: input, shape index: {}]   ;;  %s1420_s5 = inlined_call_operand.hbm [shape: bf16[128,128], index: 5, kind: input, shape index: {}]   ;;  %s1421_s6 = inlined_call_operand.vmem [shape: f32[1,128], index: 6, kind: input, shape index: {}]   ;;  %s1422_s7 = inlined_call_operand.hbm [shape: f32[16,128], index: 7, kind: output, shape index: {}]  }
   0x1   :  { %14 = vsyncpa [#allocation5 + $0x1], 0 }
   0x2   :  { %15 = vsyncpa [#allocation8], 0 }
   0x3   :  { %16 = vsyncpa [#allocation6], 0 }
   0x4   :  { %18 = vsyncpa [#allocation6 + $0x1], 0  ;;  %s1146_s24 = smov 0   ;;  %s1148_s25 = smov 0  }
   0x5   :  { %s1150_s26 = smov 0   ;;  %s1152_s27 = smov 0  }
   0x6   :  { %s1154_s28 = smov 0   ;;  %s1156_s29 = smov 0  }
   0x7 LB: > { %1429 = sst [smem:[#allocation14_spill]] %s1076_s24  ;;  %s748_s30 = sadd.s32 4294967295, %s1096_s29   ;;  %s1096_s29 = sphi %s1156_s29, %s24_s29   ;;  %s1092_s28 = sphi %s1154_s28, %s1450_s28   ;;  %s1088_s27 = sphi %s1152_s27, %s1449_s27   ;;  %s1084_s26 = sphi %s1150_s26, %s1448_s26   ;;  %s1080_s25 = sphi %s1148_s25, %s1447_s25   ;;  %s1076_s24 = sphi %s1146_s24, %s1446_s24  }
   0x8   : > { %s749_s8 = sadd.s32 4294967294, %s1096_s29   ;;  %p56_p0 = scmp.ne.s32.totalorder %s1080_s25, %s1076_s24 }
   0x9   : > { %p1180_p1 = scmp.eq.s32.totalorder %s748_s30, 0  ;;  %p1184_p2 = scmp.eq.s32.totalorder %s748_s30, 1 }
   0xa   : > { %p227_p3 = scmp.eq.s32.totalorder %s749_s8, 1  ;;  %p750_p5 = scmp.ge.s32.totalorder %s1096_s29, 1 }
   0xb   : > { %s1430_s9 = scalar_select %p1180_p1, 1, 0 }
   0xc   : > { %p1190_p4 = por %p1180_p1, %p56_p0  ;;  %p1195_p6 = por %p227_p3, %p56_p0 }
   0xd   : > { %p234_p7 = scmp.lt.s32.totalorder %s1096_s29, 3  ;;  %s1098_s14 = smov [#allocation7]  }
   0xe   : > { %s1432_s11 = scalar_select %p1190_p4, 1, 0 }
   0xf   : > { %s1433_s12 = scalar_select %p1195_p6, 1, 0 }
  0x10   : > { %p1200_p8 = pnand %p750_p5, %p234_p7  ;;  %s254_s15 = sshll.u32 %s1098_s14, 4  ;;  %s1204_s15 = int_to_ptr.vmem [resolvable:$true] %s254_s15 }
  0x11   : > { %1434 = sst [smem:[#allocation15_spill]] %s1433_s12  ;;  %s1099_s17 = smov [#allocation9]  }
  0x12   : > { %p833_p9 = pneg %p1200_p8  ;;  %s276_s18 = sshll.u32 %s1099_s17, 4  ;;  %s1215_s18 = int_to_ptr.vmem [resolvable:$true] %s276_s18 }
  0x13   : > { %s924_s21 = scalar_lea.hbm %s1418_s3, 256 }
  0x14   : > { %p1211_p11 = pnand %p833_p9, %p1180_p1  ;;  %p925_p12 = scmp.ne.s32.totalorder %s1418_s3, %s924_s21 }
  0x15   : > { %p931_p5 = scmp.lt.u32.totalorder %s924_s21, %s1418_s3 }
  0x16   : > { %p926_p13 = pneg %p1211_p11 }
  0x18   : > { %p927_p0 = pnand %p926_p13, %p925_p12 }
  0x1a   : > { %p928_p3 = pneg %p927_p0 }
  0x1c   : > { %p933_p7 = pnand %p931_p5, %p928_p3 }
  0x1e   : > { %936 = shalt.err (!%p933_p7)
}
  0x1f   : > { %s937_s14 = scalar_lea.vmem %s1204_s15, 256  ;;  %p945_p1 = scmp.lt.s32.totalorder %s1204_s15, %s1204_s15 }
  0x20   : > { %p938_p9 = scmp.ne.s32.totalorder %s1204_s15, %s937_s14  ;;  %p946_p12 = scmp.lt.s32.totalorder %s937_s14, %s937_s14 }
  0x22   : > { %p940_p10 = pnand %p938_p9, %p926_p13  ;;  %p947_p0 = por %p946_p12, %p945_p1 }
  0x24   : > { %p941_p6 = pneg %p940_p10 }
  0x26   : > { %p948_p4 = pnand %p947_p0, %p941_p6 }
  0x28   : > { %951 = shalt.err (!%p948_p4)
}
  0x29   : > { %s1100_s17 = smov 64   ;;  %s1101_s19 = smov 4  }
  0x2a   : > { %836 = dma.hbm_to_vmem [thread:$0]  (!%p1211_p11), %s1418_s3, 256, %s1204_s15, [#allocation8], %s1100_s17, %s1100_s17, %s1101_s19  }
  0x2b   : > { %s952_s30 = scalar_lea.hbm %s1420_s5, 1024 }
  0x2c   : > { %p953_p1 = scmp.ne.s32.totalorder %s1420_s5, %s952_s30  ;;  %p959_p10 = scmp.lt.u32.totalorder %s952_s30, %s1420_s5 }
  0x2e   : > { %p955_p4 = pnand %p953_p1, %p926_p13 }
  0x30   : > { %p956_p6 = pneg %p955_p4 }
  0x32   : > { %p961_p3 = pnand %p959_p10, %p956_p6 }
  0x34   : > { %964 = shalt.err (!%p961_p3)
}
  0x35   : > { %s965_s15 = scalar_lea.vmem %s1215_s18, 1024  ;;  %p973_p12 = scmp.lt.s32.totalorder %s1215_s18, %s1215_s18 }
  0x36   : > { %p966_p5 = scmp.ne.s32.totalorder %s1215_s18, %s965_s15  ;;  %p974_p0 = scmp.lt.s32.totalorder %s965_s15, %s965_s15 }
  0x38   : > { %p968_p7 = pnand %p966_p5, %p926_p13  ;;  %p975_p1 = por %p974_p0, %p973_p12 }
  0x3a   : > { %p969_p9 = pneg %p968_p7 }
  0x3c   : > { %p976_p4 = pnand %p975_p1, %p969_p9 }
  0x3e   : > { %979 = shalt.err (!%p976_p4)
}
  0x3f   : > { %839 = dma.hbm_to_vmem [thread:$0]  (!%p1211_p11), %s1420_s5, 1024, %s1215_s18, [#allocation8], %s1100_s17, %s1100_s17, %s1101_s19  }
  0x40   : > { %s36_s20 = sadd.s32 1, %s1092_s28  ;;  %s43_s21 = sadd.s32 1, %s1084_s26 }
  0x41   : > { %p38_p13 = scmp.ge.s32.totalorder %s36_s20, 2  ;;  %p50_p6 = scmp.ne.s32.totalorder %s1084_s26, %s1080_s25 }
  0x42   : > { %p51_p10 = scmp.eq.s32.totalorder %s1096_s29, 0  ;;  %p850_p3 = scmp.lt.s32.totalorder %s1096_s29, 2 }
  0x43   : > { %s1452_s20 = smov (%p38_p13, %s36_s20), 0  ;;  %p1279_p7 = por %p1184_p2, %p50_p6 }
  0x44   : > { %p52_p5 = por %p51_p10, %p50_p6  ;;  %s40_s22 = ssub.s32 %s1092_s28, %s1452_s20 }
  0x45   : > { %s1437_s16 = scalar_select %p1279_p7, 1, 0 }
  0x46   : > { %s293_s23 = sand.u32 1, %s1084_s26   ;;  %p41_p9 = scmp.eq.s32.totalorder %s40_s22, 0 }
  0x47   : > { %s755_s18 = sshll.u32 %s293_s23, 3  ;;  %s756_s17 = sshll.u32 %s1092_s28, 7 }
  0x48   : > { %s1288_s19 = scalar_select %p41_p9, %s1084_s26, %s43_s21  }
  0x49   : > { %s1293_s14 = scalar_lea.hbm %s1415_s0, %s756_s17  ;;  %s297_s10 = scalar_lea.vmem [#allocation4], %s755_s18 }
  0x4a   : > { %s304_s15 = sshll.u32 %s297_s10, 4  ;;  %p1297_p2 = pnand %p850_p3, %p52_p5  ;;  %s1301_s15 = int_to_ptr.vmem [resolvable:$true] %s304_s15 }
  0x4b   : > { %s294_s12 = scalar_lea.sflag [#allocation5], %s293_s23  ;;  %s980_s21 = scalar_lea.hbm %s1293_s14, 128 }
  0x4c   : > { %p981_p11 = scmp.ne.s32.totalorder %s1293_s14, %s980_s21  ;;  %p982_p12 = pneg %p1297_p2 }
  0x4d   : > { %s985_s17 = scalar_lea.hbm %s1415_s0, 256  ;;  %p986_p4 = scmp.lt.u32.totalorder %s1293_s14, %s1415_s0 }
  0x4e   : > { %p983_p0 = pnand %p982_p12, %p981_p11  ;;  %p987_p13 = scmp.lt.u32.totalorder %s985_s17, %s980_s21 }
  0x4f   : > { %p989_p10 = scmp.lt.u32.totalorder %s980_s21, %s1293_s14 }
  0x50   : > { %p984_p1 = pneg %p983_p0  ;;  %p988_p6 = por %p987_p13, %p986_p4 }
  0x52   : > { %p990_p3 = por %p989_p10, %p988_p6 }
  0x54   : > { %p991_p5 = pnand %p990_p3, %p984_p1 }
  0x56   : > { %994 = shalt.err (!%p991_p5)
}
  0x57   : > { %s995_s23 = scalar_lea.vmem %s1301_s15, 128  ;;  %s1102_s10 = smov [#allocation4]  }
  0x58   : > { %p996_p9 = scmp.ne.s32.totalorder %s1301_s15, %s995_s23  ;;  %s1000_s22 = sshll.u32 %s1102_s10, 4  ;;  %s1001_s22 = int_to_ptr.vmem [resolvable:$false] %s1000_s22 }
  0x59   : > { %s1002_s18 = scalar_lea.vmem %s1001_s22, 256  ;;  %p1003_p7 = scmp.lt.s32.totalorder %s1301_s15, %s1001_s22 }
  0x5a   : > { %p998_p11 = pnand %p996_p9, %p982_p12  ;;  %p1004_p4 = scmp.lt.s32.totalorder %s1002_s18, %s995_s23 }
  0x5c   : > { %p999_p0 = pneg %p998_p11  ;;  %p1005_p13 = por %p1004_p4, %p1003_p7 }
  0x5e   : > { %p1006_p6 = pnand %p1005_p13, %p999_p0 }
  0x60   : > { %1009 = shalt.err (!%p1006_p6)
}
  0x61   : > { %843 = dma.hbm_to_vmem [thread:$0]  (!%p1297_p2), %s1293_s14, 128, %s1301_s15, %s294_s12  }
  0x62   : > { %313 = sbr.rel (%p1200_p8) target bundleno = 925 (0x39d), region = 48  ;;  %s1331_s21 = sand.u32 (!%p1200_p8), 1, %s1080_s25  }
  0x63   : > { %s758_s17 = sshll.u32 (!%p1200_p8), %s1331_s21, 3  ;;  %s316_s30 = scalar_lea.sflag (!%p1200_p8), [#allocation5], %s1331_s21 }
  0x64   : > { %s319_s8 = scalar_lea.vmem (!%p1200_p8), [#allocation4], %s758_s17  ;;  %p1439_p7 = scmp.ne.s32.totalorder (!%p1200_p8), %s1432_s11, 0 }
  0x69   : > { %1063 = dma.done.wait (%p1439_p7), %s316_s30, 128  }
  0x6a   : > { %1065 = vsyncadd (%p1439_p7), %s316_s30, 4294967168  ;;  %p1440_p2 = scmp.ne.s32.totalorder %s1430_s9, 0 }
  0x6c   : > { %1067 = dma.done.wait (%p1440_p2), [#allocation8], 1280  }
  0x6d   : > { %1069 = vsyncadd (%p1440_p2), [#allocation8], 4294966016  ;;  %vm371_vm0 = vcmask 261120   ;;  %v370_v0 = vld [vmem:[%s319_s8] sm:$0xff]  ;;  %v908_v7 = vld [vmem:[#allocation7] sm:$0xff]   ;;  %v1103_v8 = vmov 0.0  }
  0x6e   : > { %v372_v1 = vsel %vm371_vm0, %v370_v0, 0.0  ;;  %793 = vmatprep.subr.bf16.mxu0 %v1103_v8  ;;  %801 = vmatprep.subr.bf16.mxu1 %v1103_v8  ;;  %v909_v9 = vld [vmem:[#allocation7 + $0x8] sm:$0xff]   ;;  %vm1104_vm1 = vmmov 0   ;;  %vm403_vm2 = vcmask 257024   ;;  %v910_v21 = vld [vmem:[#allocation9] sm:$0xff]   ;;  %v911_v22 = vld [vmem:[#allocation9 + $0x8] sm:$0xff]  }
  0x6f   : > { %373 = vadd.xlane.f32.xlu0 %v372_v1  ;;  %794 = vmatpush3.bf16.msra.mxu0 %v908_v7  ;;  %v762_v14 = vld [vmem:[%s1416_s1] ss:$0 sm:$0xff]  ;;  %v912_v23 = vld [vmem:[#allocation9 + $0x10] sm:$0xff]   ;;  %v914_v25 = vld [vmem:[#allocation9 + $0x20] sm:$0xff]   ;;  %s778_s10 = sshll.u32 %s1088_s27, 7  ;;  %s360_s22 = scalar_lea.vmem [#allocation10], %s758_s17 }
  0x70   : > { %797 = vmatprep.mubr.msk.bf16.mxu0 %vm1104_vm1, %v1103_v8  ;;  %795 = vmatprep.subr.bf16.mxu0 %v1103_v8  ;;  %v763_v16 = vld [vmem:[%s1417_s2] ss:$0 sm:$0xff]  ;;  %v915_v26 = vld [vmem:[#allocation9 + $0x28] sm:$0xff]   ;;  %v916_v27 = vld [vmem:[#allocation9 + $0x30] sm:$0xff]   ;;  %s635_s18 = sshll.u32 %s360_s22, 4  ;;  %s1366_s9 = scalar_lea.hbm %s1422_s7, %s778_s10  ;;  %s1368_s18 = int_to_ptr.vmem [resolvable:$true] %s635_s18 }
  0x71   : > { %817 = vmatprep.mubr.msk.bf16.mxu1 %vm1104_vm1, %v1103_v8  ;;  %802 = vmatpush3.bf16.msra.mxu1 %v910_v21  ;;  %v913_v24 = vld [vmem:[#allocation9 + $0x18] sm:$0xff]   ;;  %s622_s27 = scalar_lea.sflag [#allocation6], %s1331_s21  ;;  %s1010_s11 = scalar_lea.vmem %s1368_s18, 128 }
  0x72   : > { %803 = vmatprep.subr.bf16.mxu1 %v1103_v8  ;;  %v917_v28 = vld [vmem:[#allocation9 + $0x38] sm:$0xff]   ;;  %p1011_p8 = scmp.ne.s32.totalorder %s1368_s18, %s1010_s11  ;;  %p1441_p12 = scmp.ne.s32.totalorder %s1437_s16, 0 }
  0x73   : > { %796 = vmatpush3.bf16.msra.mxu0 %v909_v9  ;;  %v764_v29 = vld [vmem:[%s1419_s4] ss:$0 sm:$0xff]  ;;  %s1105_s17 = smov [#allocation10]  }
  0x74   : > { %v776_v61 = vld [vmem:[%s1421_s6] ss:$0 sm:$0xff]  ;;  %p1012_p1 = pnand %p1011_p8, %p1441_p12  ;;  %s1014_s13 = sshll.u32 %s1105_s17, 4  ;;  %s1015_s13 = int_to_ptr.vmem [resolvable:$false] %s1014_s13 }
  0x75   : > { %804 = vmatpush3.bf16.msra.mxu1 %v911_v22  ;;  %s1016_s14 = scalar_lea.vmem %s1015_s13, 256  ;;  %p1017_p3 = scmp.lt.s32.totalorder %s1368_s18, %s1015_s13 }
  0x76   : > { %805 = vmatprep.subr.bf16.mxu1 %v1103_v8  ;;  %p1013_p10 = pneg %p1012_p1  ;;  %p1018_p5 = scmp.lt.s32.totalorder %s1016_s14, %s1010_s11 }
  0x78   : > { %p1019_p9 = por %p1018_p5, %p1017_p3 }
  0x79   : > { %806 = vmatpush3.bf16.msra.mxu1 %v912_v23 }
  0x7a   : > { %807 = vmatprep.subr.bf16.mxu1 %v1103_v8  ;;  %p1020_p11 = pnand %p1019_p9, %p1013_p10 }
  0x7d   : > { %808 = vmatpush3.bf16.msra.mxu1 %v913_v24 }
  0x7e   : > { %809 = vmatprep.subr.bf16.mxu1 %v1103_v8 }
  0x81   : > { %810 = vmatpush3.bf16.msra.mxu1 %v914_v25 }
  0x82   : > { %811 = vmatprep.subr.bf16.mxu1 %v1103_v8 }
  0x85   : > { %812 = vmatpush3.bf16.msra.mxu1 %v915_v26 }
  0x86   : > { %813 = vmatprep.subr.bf16.mxu1 %v1103_v8 }
  0x89   : > { %814 = vmatpush3.bf16.msra.mxu1 %v916_v27 }
  0x8a   : > { %815 = vmatprep.subr.bf16.mxu1 %v1103_v8 }
  0x8d   : > { %816 = vmatpush3.bf16.msra.mxu1 %v917_v28 }
  0xfc   : > { %v374_v2 = vpop.xlane.xlu0 %373 }
  0xfd   : > { %v376_v3 = vmul.f32 0.03125, %v374_v2 }
  0xff   : > { %v377_v4 = vsub.f32 %v370_v0, %v376_v3 }
 0x101   : > { %v378_v5 = vmul.f32 %v377_v4, %v377_v4 }
 0x103   : > { %v379_v6 = vsel %vm371_vm0, %v378_v5, 0.0 }
 0x104   : > { %380 = vadd.xlane.f32.xlu0 %v379_v6 }
 0x191   : > { %v381_v10 = vpop.xlane.xlu0 %380 }
 0x192   : > { %v382_v11 = vmul.f32 0.03125, %v381_v10 }
 0x194   : > { %v383_v12 = vadd.f32 1e-05, %v382_v11 }
 0x196   : > { %918 = vrsqrt.f32 %v383_v12 }
 0x1a0   : > { %v919_v13 = vpop.eup %918 }
 0x1a1   : > { %v385_v15 = vmul.f32 %v919_v13, %v377_v4 }
 0x1a3   : > { %v393_v17 = vmul.f32 %v762_v14, %v385_v15 }
 0x1a5   : > { %v401_v18 = vadd.f32 %v763_v16, %v393_v17 }
 0x1a7   : > { %v402_v19 = vpack.c.bf16 %v401_v18, %v401_v18 }
 0x1a9   : > { %404 = vst.msk [vmem:[#allocation2] sm:$0xf] %vm403_vm2, %v402_v19 }
 0x1b0   : > { %v406_v20 = vld [vmem:[#allocation2] sm:$0xf] }
 0x1b1   : > { %798 = vmatmul.mubr.msk.bf16.vlgmr.msra.gmra.mrb[0].mxu0 %vm371_vm0, %v406_v20 }
 0x284   : > { %v468_v30 = vpop.f32.mrb[0].mxu0 }
 0x285   : > { %v469_v31 = vadd.f32 %v764_v29, %v468_v30  ;;  %v799_v32 = vpop.f32.mrb[1].mxu0 }
 0x286   : > { %v471_v33 = vpop.f32.mrb[2].mxu0 }
 0x287   : > { %v475_v34 = vmul.f32 0.70710677, %v469_v31  ;;  %v800_v35 = vpop.f32.mrb[3].mxu0  ;;  %v474_v57 = vmul.f32 0.5, %v469_v31 }
 0x289   : > { %v476_v36 = vand.u32 2147483647, %v475_v34  ;;  %vm495_vm3 = vcmp.ge.f32.partialorder %v475_v34, 0.0 }
 0x28b   : > { %v477_v37 = vmul.f32 0.3275911, %v476_v36  ;;  %v489_v39 = vsub.f32 0.0, %v476_v36 }
 0x28d   : > { %v478_v38 = vadd.f32 1.0, %v477_v37  ;;  %v490_v41 = vmul.f32 %v489_v39, %v476_v36 }
 0x28f   : > { %920 = vrcp.f32 %v478_v38  ;;  %v491_v44 = vmul.f32 1.442695, %v490_v41 }
 0x291   : > { %922 = vpow2.f32 %v491_v44 }
 0x299   : > { %v921_v40 = vpop.eup %920 }
 0x29a   : > { %v480_v42 = vmul.f32 1.0614054, %v921_v40 }
 0x29b   : > { %v923_v52 = vpop.eup %922 }
 0x29c   : > { %v481_v43 = vadd.f32 -1.4531521, %v480_v42 }
 0x29e   : > { %v482_v45 = vmul.f32 %v921_v40, %v481_v43 }
 0x2a0   : > { %v483_v46 = vadd.f32 1.4214138, %v482_v45 }
 0x2a2   : > { %v484_v47 = vmul.f32 %v921_v40, %v483_v46 }
 0x2a4   : > { %v485_v48 = vadd.f32 -0.28449672, %v484_v47 }
 0x2a6   : > { %v486_v49 = vmul.f32 %v921_v40, %v485_v48 }
 0x2a8   : > { %v487_v50 = vadd.f32 0.2548296, %v486_v49 }
 0x2aa   : > { %v488_v51 = vmul.f32 %v921_v40, %v487_v50 }
 0x2ac   : > { %v493_v53 = vmul.f32 %v923_v52, %v488_v51 }
 0x2ae   : > { %v494_v54 = vsub.f32 1.0, %v493_v53 }
 0x2b0   : > { %v496_v55 = vsub.f32 0.0, %v494_v54 }
 0x2b2   : > { %v497_v56 = vsel %vm495_vm3, %v494_v54, %v496_v55 }
 0x2b3   : > { %v498_v58 = vadd.f32 1.0, %v497_v56 }
 0x2b5   : > { %v499_v59 = vmul.f32 %v498_v58, %v474_v57 }
 0x2b7   : > { %v501_v60 = vpack.c.bf16 %v499_v59, %v499_v59 }
 0x2b9   : > { %818 = vmatmul.mubr.bf16.vlgmr.msra.gmra.mrb[0].mxu1 %v501_v60 }
 0x38c   : > { %v600_v62 = vpop.f32.mrb[0].mxu1 }
 0x38d   : > { %v619_v63 = vadd.f32 %v776_v61, %v600_v62  ;;  %v819_v0 = vpop.f32.mrb[1].mxu1 }
 0x38e   : > { %v603_v1 = vpop.f32.mrb[2].mxu1 }
 0x38f   : > { %620 = vst [vmem:[%s360_s22] sm:$0xff] %v619_v63  ;;  %v820_v2 = vpop.f32.mrb[3].mxu1 }
 0x390   : > { %1023 = shalt.err (!%p1020_p11)
}
 0x391   : > { %s1024_s21 = scalar_lea.hbm %s1366_s9, 128  ;;  %s1028_s12 = scalar_lea.hbm %s1422_s7, 256 }
 0x392   : > { %p1025_p0 = scmp.ne.s32.totalorder %s1366_s9, %s1024_s21  ;;  %p1029_p6 = scmp.lt.u32.totalorder %s1366_s9, %s1422_s7 }
 0x393   : > { %p1030_p7 = scmp.lt.u32.totalorder %s1028_s12, %s1024_s21  ;;  %p1032_p8 = scmp.lt.u32.totalorder %s1024_s21, %s1366_s9 }
 0x394   : > { %p1026_p4 = pnand %p1025_p0, %p1441_p12 }
 0x395   : > { %p1031_p2 = por %p1030_p7, %p1029_p6 }
 0x396   : > { %p1027_p13 = pneg %p1026_p4 }
 0x397   : > { %p1033_p1 = por %p1032_p8, %p1031_p2 }
 0x399   : > { %p1034_p10 = pnand %p1033_p1, %p1027_p13 }
 0x39b   : > { %1037 = shalt.err (!%p1034_p10)
}
 0x39c   : > { %831 = dma.vmem_to_hbm [thread:$0]  (%p1441_p12), %s1368_s18, 128, %s1366_s9, %s622_s27  }
 0x39d PF: > { %s1442_s22 = sld [smem:[#allocation14_spill]]  ;;  %s1443_s30 = sld [smem:[#allocation15_spill]] }
 0x39e   : > { %p1445_p5 = scmp.ge.s32.totalorder %s1096_s29, 2 }
 0x3a3   : > { %s647_s8 = sand.u32 1, %s1442_s22   ;;  %p1444_p3 = scmp.ne.s32.totalorder %s1443_s30, 0 }
 0x3a4   : > { %s648_s11 = scalar_lea.sflag [#allocation6], %s647_s8 }
 0x3a5   : > { %p845_p9 = pnand %p1445_p5, %p1444_p3 }
 0x3a7   : > { %1071 = dma.done.wait (!%p845_p9), %s648_s11, 128  }
 0x3a8   : > { %1073 = vsyncadd (!%p845_p9), %s648_s11, 4294967168  ;;  %s24_s29 = sadd.s32 1, %s1096_s29   ;;  %s1446_s24 = smov %s1080_s25 }
 0x3a9   : > { %p21_p11 = scmp.ge.s32.totalorder %s24_s29, 4   ;;  %s1447_s25 = smov %s1084_s26 }
 0x3aa   : > { %s1448_s26 = smov %s1288_s19  ;;  %s1449_s27 = smov %s1092_s28 }
 0x3ab   : > { %s1450_s28 = smov %s1452_s20  ;;  %23 = sbr.rel (!%p21_p11) target bundleno = 7 (0x7), region = 114 }
 0x3b2   :  { %653 = vsyncpa [#allocation5], 1 }
 0x3b3   :  { %655 = vsyncpa [#allocation5 + $0x1], 1 }
 0x3b4   :  { %656 = vsyncpa [#allocation8], 1 }
 0x3b5   :  { %657 = vsyncpa [#allocation6], 1 }
 0x3b6   :  { %659 = vsyncpa [#allocation6 + $0x1], 1 }

</bundles_post_ra>
